<compile_context>
chip_gen: v6e
topology: v6e:2x2x1
jax: 0.10.0
libtpu: 0.0.40
codegen_flags: <defaults>
</compile_context>

<pallas_src>
import functools

import jax
import jax.numpy as jnp
from jax.experimental import pallas as pl
from jax.experimental.pallas import tpu as pltpu

EPS = 1e-5
LANE = 128
SUBLANE = 8
MAX_TILE_M = 1024   # multiple of the MXU edge on all generations


def _round_up(x, m):
    return (x + m - 1) // m * m


def _pad_dim(c):
    """Pad a channel dim lane-dense (x128) only when that costs <= 2x;
    otherwise just sublane-align it and let Mosaic mask the lanes."""
    full = _round_up(c, LANE)
    return full if full <= 2 * c else _round_up(c, SUBLANE)


def _choose_tiling(m):
    """Rows padded to a multiple of 256; largest power-of-two tile (<= 1024)
    dividing the padded row count; 2-way core split when the tile count is
    even (uses both v7x TensorCores even on the accumulating sweeps)."""
    m_pad = _round_up(m, 256)
    tile_m = MAX_TILE_M
    while m_pad % tile_m:
        tile_m //= 2
    num_tiles = m_pad // tile_m
    core_splits = 2 if num_tiles % 2 == 0 else 1
    return m_pad, tile_m, num_tiles, core_splits


# --------------------------------------------------------------------------
# Kernels
# --------------------------------------------------------------------------
def _stats_kernel(x_ref, w_ref, sum_ref, sq_ref, *y_cache):
    """y = x @ W; accumulate per-channel sum / sum-of-squares into a per-core
    (8, C) partial block; optionally cache y (bf16) for the next sweep."""
    @pl.when(pl.program_id(1) == 0)
    def _():
        sum_ref[...] = jnp.zeros_like(sum_ref)
        sq_ref[...] = jnp.zeros_like(sq_ref)

    y = jnp.dot(x_ref[...], w_ref[...], preferred_element_type=jnp.float32)
    if y_cache:
        y_bf = y.astype(y_cache[0].dtype)
        y_cache[0][...] = y_bf
        y = y_bf.astype(jnp.float32)   # stats match the values the apply sees

    tm, c = y.shape
    y8 = y.reshape(tm // SUBLANE, SUBLANE, c)
    sum_ref[...] += jnp.sum(y8, axis=0)
    sq_ref[...] += jnp.sum(y8 * y8, axis=0)


def _fused_apply_stats_kernel(*refs, tile_m, m_real, mask_rows, recompute):
    """Apply stage-s folded BN + ReLU (h = max(y*a + c, 0), bf16 out) and, in
    the same pass, accumulate the NEXT stage's per-channel statistics from
    y_next = h @ W_next into per-core (8, C) partials."""
    if recompute:
        x_ref, w_ref, a_ref, c_ref, wn_ref, h_ref, sum_ref, sq_ref = refs
    else:
        y_ref, a_ref, c_ref, wn_ref, h_ref, sum_ref, sq_ref = refs

    @pl.when(pl.program_id(1) == 0)
    def _():
        sum_ref[...] = jnp.zeros_like(sum_ref)
        sq_ref[...] = jnp.zeros_like(sq_ref)

    if recompute:
        y = jnp.dot(x_ref[...], w_ref[...], preferred_element_type=jnp.float32)
    else:
        y = y_ref[...].astype(jnp.float32)

    h = jnp.maximum(y * a_ref[...] + c_ref[...], 0.0)
    if mask_rows:
        # Padded rows would otherwise pollute the next stage's statistics.
        tile = pl.program_id(0) * pl.num_programs(1) + pl.program_id(1)
        row = tile * tile_m + jax.lax.broadcasted_iota(jnp.int32, h.shape, 0)
        h = jnp.where(row < m_real, h, 0.0)

    h_bf = h.astype(h_ref.dtype)
    h_ref[...] = h_bf

    y_next = jnp.dot(h_bf, wn_ref[...], preferred_element_type=jnp.float32)
    tm, c = y_next.shape
    y8 = y_next.reshape(tm // SUBLANE, SUBLANE, c)
    sum_ref[...] += jnp.sum(y8, axis=0)
    sq_ref[...] += jnp.sum(y8 * y8, axis=0)


def _apply_kernel(x_ref, w_ref, a_ref, c_ref, o_ref):
    """Final stage: y = x @ W, out = max(y*a + c, 0).  Padded rows are sliced
    off by the wrapper, so no masking is needed here."""
    y = jnp.dot(x_ref[...], w_ref[...], preferred_element_type=jnp.float32)
    o_ref[...] = jnp.maximum(y * a_ref[...] + c_ref[...], 0.0).astype(o_ref.dtype)


# --------------------------------------------------------------------------
# BN fold epilogue (tiny per-channel math, plain JAX)
# --------------------------------------------------------------------------
def _fold_bn(partial_sum, partial_sq, gamma, beta, m_real):
    """Collapse (core, sublane) partials and fold BN into out = y*a + c."""
    s = jnp.sum(partial_sum, axis=0, keepdims=True)
    q = jnp.sum(partial_sq, axis=0, keepdims=True)
    mean = s / m_real
    # One-pass variance, guarded.  TODO(synk): switch to shifted / Welford
    # accumulation for robustness when |mean| >> std.
    var = jnp.maximum(q / m_real - mean * mean, 0.0)
    a = gamma * jax.lax.rsqrt(var + EPS)
    c = beta - mean * a
    return a.astype(jnp.float32), c.astype(jnp.float32)


# --------------------------------------------------------------------------
# Full module wrapper
# --------------------------------------------------------------------------
def addneck1_pallas(x_nchw, params):
    """x_nchw: (N, Cin, H, W) float32. params: dict of conv/bn params."""
    N, Cin, H, W = x_nchw.shape
    planes = params["w1"].shape[0]
    M = N * H * W

    cin_p = _pad_dim(Cin)
    cpl = _pad_dim(planes)
    m_pad, tile_m, num_tiles, core_splits = _choose_tiling(M)
    tiles_per_core = num_tiles // core_splits
    mask_rows = m_pad != M
    # Cache y1 (bf16 write + read, 4 B/elem) instead of re-reading the wide x
    # (2 B * Cin/Cout per output elem) + redoing the wide matmul when the
    # first conv shrinks channels by >= 2x.
    cache_y1 = cin_p >= 2 * cpl

    # ---- layout: NCHW -> channels-last (M, Cin), bf16, minimal padding ------
    x2d = jnp.transpose(x_nchw, (0, 2, 3, 1)).reshape(M, Cin).astype(jnp.bfloat16)
    if (m_pad, cin_p) != (M, Cin):
        x2d = jnp.pad(x2d, ((0, m_pad - M), (0, cin_p - Cin)))

    def conv_w(w, in_p, out_p):
        # (out, in, 1, 1) -> (in, out), zero-padded, bf16.
        w2 = jnp.transpose(w.reshape(w.shape[0], w.shape[1]), (1, 0))
        if w2.shape != (in_p, out_p):
            w2 = jnp.pad(w2, ((0, in_p - w2.shape[0]), (0, out_p - w2.shape[1])))
        return w2.astype(jnp.bfloat16)

    def bn_vec(v):
        v2 = v.reshape(1, -1).astype(jnp.float32)
        if v2.shape[1] != cpl:
            v2 = jnp.pad(v2, ((0, 0), (0, cpl - v2.shape[1])))
        return v2

    w1 = conv_w(params["w1"], cin_p, cpl)
    w2 = conv_w(params["w2"], cpl, cpl)
    w3 = conv_w(params["w3"], cpl, cpl)
    g1, b1 = bn_vec(params["g1"]), bn_vec(params["b1"])
    g2, b2 = bn_vec(params["g2"]), bn_vec(params["b2"])
    g3, b3 = bn_vec(params["g3"]), bn_vec(params["b3"])

    # ---- grid / specs -------------------------------------------------------
    grid = (core_splits, tiles_per_core)
    tpc = tiles_per_core

    def tile_map(c, i):
        return (c * tpc + i, 0)

    def core_map_fn(c, i):
        return (c, 0)

    def const_map(c, i):
        return (0, 0)

    def row_spec(width):
        return pl.BlockSpec((tile_m, width), tile_map)

    stat_spec = pl.BlockSpec((SUBLANE, cpl), core_map_fn)
    stat_shape = jax.ShapeDtypeStruct((core_splits * SUBLANE, cpl), jnp.float32)
    vec_spec = pl.BlockSpec((1, cpl), const_map)
    w1_spec = pl.BlockSpec((cin_p, cpl), const_map)
    w_spec = pl.BlockSpec((cpl, cpl), const_map)
    h_shape = jax.ShapeDtypeStruct((m_pad, cpl), jnp.bfloat16)

    # Explicit scoped-VMEM budget: double-buffered row tiles, two resident
    # (double-buffered) weight matrices, f32 matmul temporaries, stats blocks.
    need = (2 * tile_m * max(cin_p, cpl) * 2      # input row tile (x / y / h)
            + 2 * tile_m * cpl * 4                # output row tile (<= f32)
            + 2 * (cin_p * cpl + cpl * cpl) * 2   # weights
            + 2 * tile_m * cpl * 4                # f32 y / y_next temporaries
            + 4 * SUBLANE * cpl * 4 + (1 << 16))
    vmem_limit = int(min(48 << 20, max(32 << 20, need * 5 // 4)))
    cparams_acc = pltpu.CompilerParams(
        dimension_semantics=("parallel", "arbitrary"),
        vmem_limit_bytes=vmem_limit)
    cparams_par = pltpu.CompilerParams(
        dimension_semantics=("parallel", "parallel"),
        vmem_limit_bytes=vmem_limit)

    # Scheduler-hint constants.
    mm1 = 2 * m_pad * cin_p * cpl
    mm2 = 2 * m_pad * cpl * cpl
    xb, hb, ob = m_pad * cin_p * 2, m_pad * cpl * 2, m_pad * cpl * 4
    wb1, wb2 = cin_p * cpl * 2, cpl * cpl * 2
    sb = 2 * core_splits * SUBLANE * cpl * 4

    # ---- sweep 0: stage-1 stats (optionally caching y1) ---------------------
    out_shape0 = [stat_shape, stat_shape]
    out_specs0 = [stat_spec, stat_spec]
    if cache_y1:
        out_shape0.append(h_shape)
        out_specs0.append(row_spec(cpl))
    res0 = pl.pallas_call(
        _stats_kernel,
        grid=grid,
        in_specs=[row_spec(cin_p), w1_spec],
        out_specs=out_specs0,
        out_shape=out_shape0,
        compiler_params=cparams_acc,
        cost_estimate=pl.CostEstimate(
            flops=mm1, transcendentals=0,
            bytes_accessed=xb + wb1 + sb + (hb if cache_y1 else 0)),
    )(x2d, w1)
    if cache_y1:
        s1, q1, y1 = res0
    else:
        s1, q1 = res0
    a1, c1 = _fold_bn(s1, q1, g1, b1, M)

    # ---- sweep A: stage-1 apply (-> h1, bf16) fused with stage-2 stats ------
    kern_a = functools.partial(
        _fused_apply_stats_kernel, tile_m=tile_m, m_real=M,
        mask_rows=mask_rows, recompute=not cache_y1)
    if cache_y1:
        in_args_a = (y1, a1, c1, w2)
        in_specs_a = [row_spec(cpl), vec_spec, vec_spec, w_spec]
        flops_a = mm2 + 4 * m_pad * cpl
        bytes_a = hb + wb2 + hb + sb
    else:
        in_args_a = (x2d, w1, a1, c1, w2)
        in_specs_a = [row_spec(cin_p), w1_spec, vec_spec, vec_spec, w_spec]
        flops_a = mm1 + mm2 + 4 * m_pad * cpl
        bytes_a = xb + wb1 + wb2 + hb + sb
    h1, s2, q2 = pl.pallas_call(
        kern_a,
        grid=grid,
        in_specs=in_specs_a,
        out_specs=[row_spec(cpl), stat_spec, stat_spec],
        out_shape=[h_shape, stat_shape, stat_shape],
        compiler_params=cparams_acc,
        cost_estimate=pl.CostEstimate(
            flops=flops_a, transcendentals=0, bytes_accessed=bytes_a),
    )(*in_args_a)
    a2, c2 = _fold_bn(s2, q2, g2, b2, M)

    # ---- sweep B: stage-2 apply (-> h2, bf16) fused with stage-3 stats ------
    kern_b = functools.partial(
        _fused_apply_stats_kernel, tile_m=tile_m, m_real=M,
        mask_rows=mask_rows, recompute=True)
    h2, s3, q3 = pl.pallas_call(
        kern_b,
        grid=grid,
        in_specs=[row_spec(cpl), w_spec, vec_spec, vec_spec, w_spec],
        out_specs=[row_spec(cpl), stat_spec, stat_spec],
        out_shape=[h_shape, stat_shape, stat_shape],
        compiler_params=cparams_acc,
        cost_estimate=pl.CostEstimate(
            flops=2 * mm2 + 4 * m_pad * cpl, transcendentals=0,
            bytes_accessed=2 * hb + 2 * wb2 + sb),
    )(h1, w2, a2, c2, w3)
    a3, c3 = _fold_bn(s3, q3, g3, b3, M)

    # ---- sweep C: stage-3 apply, f32 output, fully parallel ------------------
    out_full = pl.pallas_call(
        _apply_kernel,
        grid=grid,
        in_specs=[row_spec(cpl), w_spec, vec_spec, vec_spec],
        out_specs=row_spec(cpl),
        out_shape=jax.ShapeDtypeStruct((m_pad, cpl), jnp.float32),
        compiler_params=cparams_par,
        cost_estimate=pl.CostEstimate(
            flops=mm2 + 3 * m_pad * cpl, transcendentals=0,
            bytes_accessed=hb + wb2 + ob),
    )(h2, w3, a3, c3)

    # (M_pad, Cp) -> (M, planes) -> NCHW.
    # TODO(synk): return out_full[:M, :planes] (channels-last) directly when
    # the consumer is channels-last, dropping this final transpose round trip.
    out2d = out_full[:M, :planes]
    return jnp.transpose(out2d.reshape(N, H, W, planes), (0, 3, 1, 2))


# --------------------------------------------------------------------------
# References
# --------------------------------------------------------------------------
def addneck1_reference(x_nchw, params):
    """Pure-f32 reference mirroring PyTorch semantics (training-mode BN)."""
    def stage(h, w, g, b):
        y = jnp.einsum("nchw,oc->nohw", h, w.reshape(w.shape[0], w.shape[1]))
        mean = jnp.mean(y, axis=(0, 2, 3), keepdims=True)
        var = jnp.mean((y - mean) ** 2, axis=(0, 2, 3), keepdims=True)
        yhat = (y - mean) * jax.lax.rsqrt(var + EPS)
        yhat = yhat * g.reshape(1, -1, 1, 1) + b.reshape(1, -1, 1, 1)
        return jnp.maximum(yhat, 0.0)

    h = stage(x_nchw, params["w1"], params["g1"], params["b1"])
    h = stage(h, params["w2"], params["g2"], params["b2"])
    h = stage(h, params["w3"], params["g3"], params["b3"])
    return h


def addneck1_matched_reference(x_nchw, params):
    """Pure-JAX reference using the kernel's exact precision policy: bf16
    matmul inputs, f32 accumulation / one-pass BN stats / folded apply, bf16
    inter-stage activations, and a bf16-rounded y1 iff the kernel caches it."""
    N, Cin, H, W = x_nchw.shape
    planes = params["w3"].shape[0]
    M = N * H * W
    cache_first = _pad_dim(Cin) >= 2 * _pad_dim(planes)
    h = jnp.transpose(x_nchw, (0, 2, 3, 1)).reshape(M, Cin)

    def stage(h, w, g, b, cache):
        wm = jnp.transpose(w.reshape(w.shape[0], w.shape[1]), (1, 0))
        y = jnp.dot(h.astype(jnp.bfloat16), wm.astype(jnp.bfloat16),
                    preferred_element_type=jnp.float32)
        if cache:
            y = y.astype(jnp.bfloat16).astype(jnp.float32)
        mean = jnp.sum(y, axis=0, keepdims=True) / M
        var = jnp.maximum(jnp.sum(y * y, axis=0, keepdims=True) / M
                          - mean * mean, 0.0)
        a = g.reshape(1, -1) * jax.lax.rsqrt(var + EPS)
        c = b.reshape(1, -1) - mean * a
        return jnp.maximum(y * a + c, 0.0)

    h = stage(h, params["w1"], params["g1"], params["b1"], cache_first)
    h = stage(h.astype(jnp.bfloat16), params["w2"], params["g2"], params["b2"], False)
    h = stage(h.astype(jnp.bfloat16), params["w3"], params["g3"], params["b3"], False)
    return jnp.transpose(h.reshape(N, H, W, planes), (0, 3, 1, 2))


def make_params(key, inplanes, planes):
    ks = jax.random.split(key, 9)
    return {
        "w1": jax.random.normal(ks[0], (planes, inplanes, 1, 1), jnp.float32) * 0.1,
        "w2": jax.random.normal(ks[1], (planes, planes, 1, 1), jnp.float32) * 0.1,
        "w3": jax.random.normal(ks[2], (planes, planes, 1, 1), jnp.float32) * 0.1,
        "g1": 1.0 + 0.1 * jax.random.normal(ks[3], (planes,), jnp.float32),
        "b1": 0.1 * jax.random.normal(ks[4], (planes,), jnp.float32),
        "g2": 1.0 + 0.1 * jax.random.normal(ks[5], (planes,), jnp.float32),
        "b2": 0.1 * jax.random.normal(ks[6], (planes,), jnp.float32),
        "g3": 1.0 + 0.1 * jax.random.normal(ks[7], (planes,), jnp.float32),
        "b3": 0.1 * jax.random.normal(ks[8], (planes,), jnp.float32),
    }


if __name__ == "__main__":
    key = jax.random.PRNGKey(0)
    kx, kp, kx2, kp2 = jax.random.split(key, 4)

    # ---- config 1: module-small shapes (recompute path, single tile) -------
    N, Cin, H, W, planes = 2, 4, 16, 16, 8
    x = jax.random.normal(kx, (N, Cin, H, W), jnp.float32)
    params = make_params(kp, Cin, planes)

    out = jax.block_until_ready(addneck1_pallas(x, params))
    assert out.shape == (N, planes, H, W)
    assert jnp.all(jnp.isfinite(out))

    ref_matched = addneck1_matched_reference(x, params)
    assert jnp.allclose(out, ref_matched, atol=2e-3, rtol=2e-3), \
        "mismatch vs precision-matched reference (config 1)"
    ref_f32 = addneck1_reference(x, params)
    assert jnp.allclose(out, ref_f32, atol=1e-1, rtol=1e-1), \
        "mismatch vs f32 reference (config 1)"

    # ---- config 2: exercises the cached-y1 path (Cin >= 2*planes), channel /
    # row padding + masking, multi-tile grid and the 2-way per-core stats split.
    N2, Cin2, H2, W2, planes2 = 8, 70, 15, 15, 48
    x2 = jax.random.normal(kx2, (N2, Cin2, H2, W2), jnp.float32)
    params2 = make_params(kp2, Cin2, planes2)

    out2 = jax.block_until_ready(addneck1_pallas(x2, params2))
    assert out2.shape == (N2, planes2, H2, W2)
    assert jnp.all(jnp.isfinite(out2))
    ref2 = addneck1_matched_reference(x2, params2)
    assert jnp.allclose(out2, ref2, atol=5e-3, rtol=5e-3), \
        "mismatch vs precision-matched reference (config 2)"

    print("KERNEL_OK")
</pallas_src>

<mosaic_0001>
module attributes {stable_mosaic.version = 11 : i64} {
  func.func @_stats_kernel(%arg0: i32, %arg1: i32, %arg2: memref<512x8xbf16, #tpu.memory_space<vmem>>, %arg3: memref<8x8xbf16, #tpu.memory_space<vmem>>, %arg4: memref<8x8xf32, #tpu.memory_space<vmem>>, %arg5: memref<8x8xf32, #tpu.memory_space<vmem>>) attributes {dimension_semantics = [#tpu.dimension_semantics<parallel>, #tpu.dimension_semantics<arbitrary>], iteration_bounds = array<i64: 1, 1>, scalar_prefetch = 0 : i64, scratch_operands = 0 : i64, tpu.core_type = #tpu.core_type<tc>, window_params = [{transform_indices = @transform_0, window_bounds = array<i64: 512, 8>}, {pipeline_mode = #tpu.pipeline_mode<synchronous>, transform_indices = @transform_1, window_bounds = array<i64: 8, 8>}, {transform_indices = @transform_2, window_bounds = array<i64: 8, 8>}, {transform_indices = @transform_3, window_bounds = array<i64: 8, 8>}]} {
    %c0_i32 = arith.constant 0 : i32
    %0 = arith.cmpi eq, %arg1, %c0_i32 : i32
    %1 = arith.extui %0 : i1 to i32
    %c0_i32_0 = arith.constant 0 : i32
    %2 = arith.cmpi ne, %1, %c0_i32_0 : i32
    scf.if %2 {
      %cst_14 = arith.constant 0.000000e+00 : f32
      %16 = vector.broadcast %cst_14 : f32 to vector<8x8xf32>
      %c0_15 = arith.constant 0 : index
      %c0_16 = arith.constant 0 : index
      %17 = vector.load %arg4[%c0_15, %c0_16] : memref<8x8xf32, #tpu.memory_space<vmem>>, vector<8x8xf32>
      tpu.vector_store %arg4[%c0_15, %c0_16], %16 {strides = array<i32>} : memref<8x8xf32, #tpu.memory_space<vmem>>, vector<8x8xf32>,
      %cst_17 = arith.constant 0.000000e+00 : f32
      %18 = vector.broadcast %cst_17 : f32 to vector<8x8xf32>
      %c0_18 = arith.constant 0 : index
      %c0_19 = arith.constant 0 : index
      %19 = vector.load %arg5[%c0_18, %c0_19] : memref<8x8xf32, #tpu.memory_space<vmem>>, vector<8x8xf32>
      tpu.vector_store %arg5[%c0_18, %c0_19], %18 {strides = array<i32>} : memref<8x8xf32, #tpu.memory_space<vmem>>, vector<8x8xf32>,
    } else {
    }
    %c0 = arith.constant 0 : index
    %c0_1 = arith.constant 0 : index
    %3 = vector.load %arg2[%c0, %c0_1] : memref<512x8xbf16, #tpu.memory_space<vmem>>, vector<512x8xbf16>
    %c0_2 = arith.constant 0 : index
    %c0_3 = arith.constant 0 : index
    %4 = vector.load %arg3[%c0_2, %c0_3] : memref<8x8xbf16, #tpu.memory_space<vmem>>, vector<8x8xbf16>
    %cst = arith.constant dense<0.000000e+00> : vector<512x8xf32>
    %5 = tpu.matmul %3, %4, %cst {dimension_numbers = #tpu.dot_dimension_numbers<[1], [0], [0], [1], [0, 0, 1, 1], [], []>} : vector<512x8xbf16>, vector<8x8xbf16>, vector<512x8xf32> -> vector<512x8xf32>
    %6 = vector.shape_cast %5 : vector<512x8xf32> to vector<64x8x8xf32>
    %c0_4 = arith.constant 0 : index
    %c0_5 = arith.constant 0 : index
    %7 = vector.load %arg4[%c0_4, %c0_5] : memref<8x8xf32, #tpu.memory_space<vmem>>, vector<8x8xf32>
    %cst_6 = arith.constant dense<0.000000e+00> : vector<8x8xf32>
    %8 = vector.multi_reduction <add>, %6, %cst_6 [0] : vector<64x8x8xf32> to vector<8x8xf32>
    %9 = arith.addf %7, %8 : vector<8x8xf32>
    %c0_7 = arith.constant 0 : index
    %c0_8 = arith.constant 0 : index
    %10 = vector.load %arg4[%c0_7, %c0_8] : memref<8x8xf32, #tpu.memory_space<vmem>>, vector<8x8xf32>
    tpu.vector_store %arg4[%c0_7, %c0_8], %9 {strides = array<i32>} : memref<8x8xf32, #tpu.memory_space<vmem>>, vector<8x8xf32>,
    %c0_9 = arith.constant 0 : index
    %c0_10 = arith.constant 0 : index
    %11 = vector.load %arg5[%c0_9, %c0_10] : memref<8x8xf32, #tpu.memory_space<vmem>>, vector<8x8xf32>
    %12 = arith.mulf %6, %6 : vector<64x8x8xf32>
    %cst_11 = arith.constant dense<0.000000e+00> : vector<8x8xf32>
    %13 = vector.multi_reduction <add>, %12, %cst_11 [0] : vector<64x8x8xf32> to vector<8x8xf32>
    %14 = arith.addf %11, %13 : vector<8x8xf32>
    %c0_12 = arith.constant 0 : index
    %c0_13 = arith.constant 0 : index
    %15 = vector.load %arg5[%c0_12, %c0_13] : memref<8x8xf32, #tpu.memory_space<vmem>>, vector<8x8xf32>
    tpu.vector_store %arg5[%c0_12, %c0_13], %14 {strides = array<i32>} : memref<8x8xf32, #tpu.memory_space<vmem>>, vector<8x8xf32>,
    return
  }
  func.func @transform_0(%arg0: i32, %arg1: i32) -> (i32, i32) {
    %c1_i32 = arith.constant 1 : i32
    %0 = arith.muli %arg0, %c1_i32 : i32
    %1 = arith.addi %0, %arg1 : i32
    %c0_i32 = arith.constant 0 : i32
    %c0_i32_0 = arith.constant 0 : i32
    return %1, %c0_i32 : i32, i32
  }
  func.func @transform_1(%arg0: i32, %arg1: i32) -> (i32, i32) {
    %c0_i32 = arith.constant 0 : i32
    %c0_i32_0 = arith.constant 0 : i32
    %c0_i32_1 = arith.constant 0 : i32
    return %c0_i32, %c0_i32_0 : i32, i32
  }
  func.func @transform_2(%arg0: i32, %arg1: i32) -> (i32, i32) {
    %c0_i32 = arith.constant 0 : i32
    %c0_i32_0 = arith.constant 0 : i32
    return %arg0, %c0_i32 : i32, i32
  }
  func.func @transform_3(%arg0: i32, %arg1: i32) -> (i32, i32) {
    %c0_i32 = arith.constant 0 : i32
    %c0_i32_0 = arith.constant 0 : i32
    return %arg0, %c0_i32 : i32, i32
  }
}

</mosaic_0001>

<bundles_post_ra>
// kernel: tpu_custom_call.1
= control target key start
LH: loop header
LB: loop body
LE: loop exit
PB: predicated region body
PF: predicated region fallthrough
CT: control target
= control target key end

     0   :  { %9 = vsyncpa [#allocation3], 0  ;;  %vm367_vm0 = vcmask 1043456   ;;  %vm42_vm1 = vcmask 64512   ;;  %s1676_s0 = inlined_call_operand.vmem [shape: bf16[512,8], index: 0, kind: input, shape index: {}]   ;;  %s1677_s1 = inlined_call_operand.vmem [shape: bf16[8,8], index: 1, kind: input, shape index: {}]   ;;  %s1678_s2 = inlined_call_operand.hbm [shape: f32[8,8], index: 2, kind: output, shape index: {0}]   ;;  %s1679_s3 = inlined_call_operand.hbm [shape: f32[8,8], index: 3, kind: output, shape index: {1}]  }
   0x1   :  { %v109_v0 = vld [vmem:[%s1677_s1] sm:$0xf]  ;;  %v1189_v3 = vld [vmem:[%s1676_s0 + $0x8] sm:$0xff]   ;;  %v1190_v4 = vld [vmem:[%s1676_s0 + $0x10] sm:$0xff]  }
   0x2   :  { %1183 = vmatprep.subr.msk.bf16.mxu0 %vm367_vm0, %v109_v0  ;;  %v369_v1 = vsel %vm367_vm0, %v109_v0, 0  ;;  %v1188_v2 = vld [vmem:[%s1676_s0] sm:$0xff]   ;;  %1184 = vmatprep.subr.msk.bf16.mxu1 %vm367_vm0, %v109_v0  ;;  %v1191_v5 = vld [vmem:[%s1676_s0 + $0x18] sm:$0xff]   ;;  %v1193_v7 = vld [vmem:[%s1676_s0 + $0x28] sm:$0xff]  }
   0x3   :  { %1116 = vmatpush3.bf16.msra.mxu0 %v369_v1  ;;  %1182 = vmatpush3.bf16.msra.mxu1 %v369_v1  ;;  %v1192_v6 = vld [vmem:[%s1676_s0 + $0x20] sm:$0xff]   ;;  %v1194_v8 = vld [vmem:[%s1676_s0 + $0x30] sm:$0xff]   ;;  %v1205_v10 = vld [vmem:[%s1676_s0 + $0x88] sm:$0xff]  }
   0x4   :  { %1117 = vmatprep.mubr.msk.bf16.mxu0 %vm42_vm1, %v1188_v2  ;;  %v1204_v9 = vld [vmem:[%s1676_s0 + $0x80] sm:$0xff]   ;;  %v1206_v11 = vld [vmem:[%s1676_s0 + $0x90] sm:$0xff]   ;;  %v1195_v12 = vld [vmem:[%s1676_s0 + $0x38] sm:$0xff]  }
   0x5   :  { %1149 = vmatprep.mubr.msk.bf16.mxu1 %vm42_vm1, %v1204_v9  ;;  %v1207_v13 = vld [vmem:[%s1676_s0 + $0x98] sm:$0xff]   ;;  %v1208_v14 = vld [vmem:[%s1676_s0 + $0xa0] sm:$0xff]   ;;  %v1209_v16 = vld [vmem:[%s1676_s0 + $0xa8] sm:$0xff]  }
   0x6   :  { %1118 = vmatmul.mubr.msk.bf16.vlgmr.msra.gmra.mxu0 %vm42_vm1, %v1189_v3  ;;  %1150 = vmatmul.mubr.msk.bf16.vlgmr.msra.gmra.mxu1 %vm42_vm1, %v1205_v10  ;;  %v1196_v15 = vld [vmem:[%s1676_s0 + $0x40] sm:$0xff]  }
   0x7   :  { %1121 = vmatprep.mubr.msk.bf16.mxu0 %vm42_vm1, %v1190_v4  ;;  %1153 = vmatprep.mubr.msk.bf16.mxu1 %vm42_vm1, %v1206_v11 }
   0xe   :  { %1122 = vmatmul.mubr.msk.bf16.gmra.mxu0 %vm42_vm1, %v1191_v5  ;;  %1154 = vmatmul.mubr.msk.bf16.gmra.mxu1 %vm42_vm1, %v1207_v13 }
   0xf   :  { %1125 = vmatprep.mubr.msk.bf16.mxu0 %vm42_vm1, %v1192_v6  ;;  %1157 = vmatprep.mubr.msk.bf16.mxu1 %vm42_vm1, %v1208_v14 }
  0x16   :  { %1126 = vmatmul.mubr.msk.bf16.gmra.mxu0 %vm42_vm1, %v1193_v7 }
  0x17   :  { %1129 = vmatprep.mubr.msk.bf16.mxu0 %vm42_vm1, %v1194_v8 }
  0x1e   :  { %1130 = vmatmul.mubr.msk.bf16.gmra.mxu0 %vm42_vm1, %v1195_v12 }
  0x1f   :  { %1133 = vmatprep.mubr.msk.bf16.mxu0 %vm42_vm1, %v1196_v15 }
  0x20   :  { %10 = vsyncpa [#allocation5], 0  ;;  %v1197_v17 = vld [vmem:[%s1676_s0 + $0x48] sm:$0xff]   ;;  %v1210_v18 = vld [vmem:[%s1676_s0 + $0xb0] sm:$0xff]   ;;  %1158 = vmatmul.mubr.msk.bf16.gmra.mxu1 %vm42_vm1, %v1209_v16  ;;  %v1264_v34 = vmov 0.0   ;;  %s1266_s22 = smov [#allocation4]  }
  0x21   :  { %v1198_v19 = vld [vmem:[%s1676_s0 + $0x50] sm:$0xff]   ;;  %1161 = vmatprep.mubr.msk.bf16.mxu1 %vm42_vm1, %v1210_v18  ;;  %v1211_v20 = vld [vmem:[%s1676_s0 + $0xb8] sm:$0xff]   ;;  %v1212_v22 = vld [vmem:[%s1676_s0 + $0xc0] sm:$0xff]   ;;  %43 = vst.msk [vmem:[#allocation2] sm:$0xff] %vm42_vm1, %v1264_v34  ;;  %s1000_s23 = sshll.u32 %s1266_s22, 4  ;;  %s1001_s23 = int_to_ptr.vmem [resolvable:$true] %s1000_s23 }
  0x22   :  { %v1199_v21 = vld [vmem:[%s1676_s0 + $0x58] sm:$0xff]   ;;  %v1200_v23 = vld [vmem:[%s1676_s0 + $0x60] sm:$0xff]   ;;  %v1213_v24 = vld [vmem:[%s1676_s0 + $0xc8] sm:$0xff]   ;;  %44 = vst.msk [vmem:[#allocation4] sm:$0xff] %vm42_vm1, %v1264_v34 }
  0x23   :  { %v1201_v25 = vld [vmem:[%s1676_s0 + $0x68] sm:$0xff]   ;;  %v1214_v26 = vld [vmem:[%s1676_s0 + $0xd0] sm:$0xff]   ;;  %v1215_v28 = vld [vmem:[%s1676_s0 + $0xd8] sm:$0xff]  }
  0x24   :  { %v1202_v27 = vld [vmem:[%s1676_s0 + $0x70] sm:$0xff]   ;;  %v1203_v29 = vld [vmem:[%s1676_s0 + $0x78] sm:$0xff]   ;;  %v1216_v30 = vld [vmem:[%s1676_s0 + $0xe0] sm:$0xff]  }
  0x25   :  { %v1217_v31 = vld [vmem:[%s1676_s0 + $0xe8] sm:$0xff]   ;;  %v1218_v32 = vld [vmem:[%s1676_s0 + $0xf0] sm:$0xff]   ;;  %v1219_v33 = vld [vmem:[%s1676_s0 + $0xf8] sm:$0xff]   ;;  %s1265_s0 = smov [#allocation2]  }
  0x26   :  { %1134 = vmatmul.mubr.msk.bf16.gmra.mxu0 %vm42_vm1, %v1197_v17  ;;  %s990_s21 = sshll.u32 %s1265_s0, 4  ;;  %s991_s21 = int_to_ptr.vmem [resolvable:$true] %s990_s21 }
  0x27   :  { %1137 = vmatprep.mubr.msk.bf16.mxu0 %vm42_vm1, %v1198_v19  ;;  %s1220_s24 = scalar_lea.vmem %s991_s21, 128  ;;  %p1225_p1 = scmp.lt.s32.totalorder %s991_s21, %s991_s21 }
  0x28   :  { %1162 = vmatmul.mubr.msk.bf16.gmra.mxu1 %vm42_vm1, %v1211_v20  ;;  %p1221_p0 = scmp.ne.s32.totalorder %s991_s21, %s1220_s24  ;;  %p1226_p2 = scmp.lt.s32.totalorder %s1220_s24, %s1220_s24 }
  0x29   :  { %1165 = vmatprep.mubr.msk.bf16.mxu1 %vm42_vm1, %v1212_v22 }
  0x2a   :  { %p1227_p3 = por %p1226_p2, %p1225_p1 }
  0x2c   :  { %p1228_p4 = pnand %p1227_p3, %p1221_p0 }
  0x2e   :  { %1138 = vmatmul.mubr.msk.bf16.gmra.mxu0 %vm42_vm1, %v1199_v21 }
  0x2f   :  { %1141 = vmatprep.mubr.msk.bf16.mxu0 %vm42_vm1, %v1200_v23 }
  0x30   :  { %1166 = vmatmul.mubr.msk.bf16.gmra.mxu1 %vm42_vm1, %v1213_v24 }
  0x31   :  { %1169 = vmatprep.mubr.msk.bf16.mxu1 %vm42_vm1, %v1214_v26 }
  0x36   :  { %1142 = vmatmul.mubr.msk.bf16.gmra.mxu0 %vm42_vm1, %v1201_v25 }
  0x37   :  { %1145 = vmatprep.mubr.msk.bf16.mxu0 %vm42_vm1, %v1202_v27 }
  0x38   :  { %1170 = vmatmul.mubr.msk.bf16.gmra.mxu1 %vm42_vm1, %v1215_v28 }
  0x39   :  { %1173 = vmatprep.mubr.msk.bf16.mxu1 %vm42_vm1, %v1216_v30 }
  0x3e   :  { %1146 = vmatmul.mubr.msk.bf16.gmra.mxu0 %vm42_vm1, %v1203_v29 }
  0x40   :  { %1174 = vmatmul.mubr.msk.bf16.gmra.mxu1 %vm42_vm1, %v1217_v31 }
  0x41   :  { %1177 = vmatprep.mubr.msk.bf16.mxu1 %vm42_vm1, %v1218_v32 }
  0x48   :  { %1178 = vmatmul.mubr.msk.bf16.gmra.mxu1 %vm42_vm1, %v1219_v33 }
  0xc6   :  { %v1119_v35 = vpop.f32.mrf.mxu0  ;;  %v1431_v4 = vpop.f32.mrf.mxu1 }
  0xc7   :  { %v793_v40 = vmul.f32 %v1119_v35, %v1119_v35  ;;  %v664_v46 = vsel %vm42_vm1, %v1119_v35, 0.0 }
  0xc8   :  { %v405_v36 = vpop.f32.mrf.mxu0  ;;  %v1435_v11 = vpop.f32.mrf.mxu1 }
  0xc9   :  { %v791_v38 = vmul.f32 %v405_v36, %v405_v36  ;;  %v661_v41 = vsel %vm42_vm1, %v405_v36, 0.0  ;;  %v858_v53 = vsel %vm42_vm1, %v793_v40, 0.0 }
  0xca   :  { %v1120_v37 = vpop.f32.mrf.mxu0  ;;  %v1439_v18 = vpop.f32.mrf.mxu1 }
  0xcb   :  { %v855_v47 = vsel %vm42_vm1, %v791_v38, 0.0  ;;  %v794_v48 = vmul.f32 %v1120_v37, %v1120_v37  ;;  %v666_v54 = vsel %vm42_vm1, %v1120_v37, 0.0 }
  0xcc   :  { %v408_v39 = vpop.f32.mrf.mxu0  ;;  %v1443_v24 = vpop.f32.mrf.mxu1 }
  0xcd   :  { %v662_v42 = vsel %vm42_vm1, %v408_v39, 0.0  ;;  %v792_v43 = vmul.f32 %v408_v39, %v408_v39  ;;  %v860_v59 = vsel %vm42_vm1, %v794_v48, 0.0 }
  0xce   :  { %v663_v44 = vadd.f32 %v662_v42, %v661_v41  ;;  %v1123_v45 = vpop.f32.mrf.mxu0  ;;  %v1447_v32 = vpop.f32.mrf.mxu1 }
  0xcf   :  { %v856_v49 = vsel %vm42_vm1, %v792_v43, 0.0  ;;  %v797_v0 = vmul.f32 %v1123_v45, %v1123_v45  ;;  %v672_v8 = vsel %vm42_vm1, %v1123_v45, 0.0 }
  0xd0   :  { %v665_v50 = vadd.f32 %v664_v46, %v663_v44  ;;  %v857_v51 = vadd.f32 %v856_v49, %v855_v47  ;;  %v421_v52 = vpop.f32.mrf.mxu0  ;;  %v1451_v39 = vpop.f32.mrf.mxu1 }
  0xd1   :  { %v795_v55 = vmul.f32 %v421_v52, %v421_v52  ;;  %v668_v60 = vsel %vm42_vm1, %v421_v52, 0.0  ;;  %v866_v15 = vsel %vm42_vm1, %v797_v0, 0.0 }
  0xd2   :  { %v859_v56 = vadd.f32 %v858_v53, %v857_v51  ;;  %v667_v57 = vadd.f32 %v666_v54, %v665_v50  ;;  %v1124_v58 = vpop.f32.mrf.mxu0  ;;  %v1455_v46 = vpop.f32.mrf.mxu1 }
  0xd3   :  { %v862_v1 = vsel %vm42_vm1, %v795_v55, 0.0  ;;  %v798_v9 = vmul.f32 %v1124_v58, %v1124_v58  ;;  %v674_v16 = vsel %vm42_vm1, %v1124_v58, 0.0 }
  0xd4   :  { %v669_v61 = vadd.f32 %v668_v60, %v667_v57  ;;  %v861_v62 = vadd.f32 %v860_v59, %v859_v56  ;;  %v424_v63 = vpop.f32.mrf.mxu0  ;;  %v1459_v52 = vpop.f32.mrf.mxu1 }
  0xd5   :  { %v670_v2 = vsel %vm42_vm1, %v424_v63, 0.0  ;;  %v796_v3 = vmul.f32 %v424_v63, %v424_v63  ;;  %v868_v22 = vsel %vm42_vm1, %v798_v9, 0.0 }
  0xd6   :  { %v863_v5 = vadd.f32 %v862_v1, %v861_v62  ;;  %v671_v6 = vadd.f32 %v670_v2, %v669_v61  ;;  %v1127_v7 = vpop.f32.mrf.mxu0 }
  0xd7   :  { %v864_v10 = vsel %vm42_vm1, %v796_v3, 0.0  ;;  %v801_v28 = vmul.f32 %v1127_v7, %v1127_v7  ;;  %v680_v36 = vsel %vm42_vm1, %v1127_v7, 0.0 }
  0xd8   :  { %v673_v12 = vadd.f32 %v672_v8, %v671_v6  ;;  %v865_v13 = vadd.f32 %v864_v10, %v863_v5  ;;  %v437_v14 = vpop.f32.mrf.mxu0 }
  0xd9   :  { %v799_v17 = vmul.f32 %v437_v14, %v437_v14  ;;  %v676_v23 = vsel %vm42_vm1, %v437_v14, 0.0  ;;  %v874_v43 = vsel %vm42_vm1, %v801_v28, 0.0 }
  0xda   :  { %v867_v19 = vadd.f32 %v866_v15, %v865_v13  ;;  %v675_v20 = vadd.f32 %v674_v16, %v673_v12  ;;  %v1128_v21 = vpop.f32.mrf.mxu0 }
  0xdb   :  { %v870_v29 = vsel %vm42_vm1, %v799_v17, 0.0  ;;  %v802_v37 = vmul.f32 %v1128_v21, %v1128_v21  ;;  %v682_v44 = vsel %vm42_vm1, %v1128_v21, 0.0 }
  0xdc   :  { %v677_v25 = vadd.f32 %v676_v23, %v675_v20  ;;  %v869_v26 = vadd.f32 %v868_v22, %v867_v19  ;;  %v440_v27 = vpop.f32.mrf.mxu0 }
  0xdd   :  { %v678_v30 = vsel %vm42_vm1, %v440_v27, 0.0  ;;  %v800_v31 = vmul.f32 %v440_v27, %v440_v27  ;;  %v876_v50 = vsel %vm42_vm1, %v802_v37, 0.0 }
  0xde   :  { %v871_v33 = vadd.f32 %v870_v29, %v869_v26  ;;  %v679_v34 = vadd.f32 %v678_v30, %v677_v25  ;;  %v1131_v35 = vpop.f32.mrf.mxu0 }
  0xdf   :  { %v872_v38 = vsel %vm42_vm1, %v800_v31, 0.0  ;;  %v805_v56 = vmul.f32 %v1131_v35, %v1131_v35  ;;  %v688_v0 = vsel %vm42_vm1, %v1131_v35, 0.0 }
  0xe0   :  { %v681_v40 = vadd.f32 %v680_v36, %v679_v34  ;;  %v873_v41 = vadd.f32 %v872_v38, %v871_v33  ;;  %v453_v42 = vpop.f32.mrf.mxu0  ;;  %v1463_v60 = vpop.f32.mrf.mxu1 }
  0xe1   :  { %v803_v45 = vmul.f32 %v453_v42, %v453_v42  ;;  %v684_v51 = vsel %vm42_vm1, %v453_v42, 0.0  ;;  %v882_v8 = vsel %vm42_vm1, %v805_v56, 0.0 }
  0xe2   :  { %v875_v47 = vadd.f32 %v874_v43, %v873_v41  ;;  %v683_v48 = vadd.f32 %v682_v44, %v681_v40  ;;  %v1132_v49 = vpop.f32.mrf.mxu0  ;;  %v1467_v7 = vpop.f32.mrf.mxu1 }
  0xe3   :  { %v878_v57 = vsel %vm42_vm1, %v803_v45, 0.0  ;;  %v806_v1 = vmul.f32 %v1132_v49, %v1132_v49  ;;  %v690_v9 = vsel %vm42_vm1, %v1132_v49, 0.0 }
  0xe4   :  { %v685_v53 = vadd.f32 %v684_v51, %v683_v48  ;;  %v877_v54 = vadd.f32 %v876_v50, %v875_v47  ;;  %v456_v55 = vpop.f32.mrf.mxu0  ;;  %v1473_v21 = vpop.f32.mrf.mxu1 }
  0xe5   :  { %v686_v58 = vsel %vm42_vm1, %v456_v55, 0.0  ;;  %v804_v59 = vmul.f32 %v456_v55, %v456_v55  ;;  %v884_v15 = vsel %vm42_vm1, %v806_v1, 0.0 }
  0xe6   :  { %v879_v61 = vadd.f32 %v878_v57, %v877_v54  ;;  %v687_v62 = vadd.f32 %v686_v58, %v685_v53  ;;  %v1135_v63 = vpop.f32.mrf.mxu0  ;;  %v1479_v37 = vpop.f32.mrf.mxu1 }
  0xe7   :  { %v880_v2 = vsel %vm42_vm1, %v804_v59, 0.0  ;;  %v809_v22 = vmul.f32 %v1135_v63, %v1135_v63  ;;  %v696_v30 = vsel %vm42_vm1, %v1135_v63, 0.0 }
  0xe8   :  { %v689_v3 = vadd.f32 %v688_v0, %v687_v62  ;;  %v881_v5 = vadd.f32 %v880_v2, %v879_v61  ;;  %v469_v6 = vpop.f32.mrf.mxu0  ;;  %v1485_v51 = vpop.f32.mrf.mxu1 }
  0xe9   :  { %v807_v10 = vmul.f32 %v469_v6, %v469_v6  ;;  %v692_v16 = vsel %vm42_vm1, %v469_v6, 0.0  ;;  %v890_v38 = vsel %vm42_vm1, %v809_v22, 0.0 }
  0xea   :  { %v883_v12 = vadd.f32 %v882_v8, %v881_v5  ;;  %v691_v13 = vadd.f32 %v690_v9, %v689_v3  ;;  %v1136_v14 = vpop.f32.mrf.mxu0  ;;  %v1491_v3 = vpop.f32.mrf.mxu1 }
  0xeb   :  { %v886_v23 = vsel %vm42_vm1, %v807_v10, 0.0  ;;  %v810_v31 = vmul.f32 %v1136_v14, %v1136_v14  ;;  %v698_v40 = vsel %vm42_vm1, %v1136_v14, 0.0 }
  0xec   :  { %v693_v17 = vadd.f32 %v692_v16, %v691_v13  ;;  %v885_v19 = vadd.f32 %v884_v15, %v883_v12  ;;  %v472_v20 = vpop.f32.mrf.mxu0 }
  0xed   :  { %v694_v25 = vsel %vm42_vm1, %v472_v20, 0.0  ;;  %v808_v26 = vmul.f32 %v472_v20, %v472_v20  ;;  %v892_v45 = vsel %vm42_vm1, %v810_v31, 0.0 }
  0xee   :  { %v887_v27 = vadd.f32 %v886_v23, %v885_v19  ;;  %v695_v28 = vadd.f32 %v694_v25, %v693_v17  ;;  %v1139_v29 = vpop.f32.mrf.mxu0  ;;  %v1497_v19 = vpop.f32.mrf.mxu1 }
  0xef   :  { %v888_v33 = vsel %vm42_vm1, %v808_v26, 0.0  ;;  %v813_v53 = vmul.f32 %v1139_v29, %v1139_v29  ;;  %v704_v61 = vsel %vm42_vm1, %v1139_v29, 0.0 }
  0xf0   :  { %v697_v34 = vadd.f32 %v696_v30, %v695_v28  ;;  %v889_v35 = vadd.f32 %v888_v33, %v887_v27  ;;  %v485_v36 = vpop.f32.mrf.mxu0 }
  0xf1   :  { %v811_v41 = vmul.f32 %v485_v36, %v485_v36  ;;  %v700_v47 = vsel %vm42_vm1, %v485_v36, 0.0  ;;  %v898_v5 = vsel %vm42_vm1, %v813_v53, 0.0  ;;  %v1503_v36 = vpop.f32.mrf.mxu1 }
  0xf2   :  { %v891_v42 = vadd.f32 %v890_v38, %v889_v35  ;;  %v699_v43 = vadd.f32 %v698_v40, %v697_v34  ;;  %v1140_v44 = vpop.f32.mrf.mxu0 }
  0xf3   :  { %v894_v54 = vsel %vm42_vm1, %v811_v41, 0.0  ;;  %v814_v62 = vmul.f32 %v1140_v44, %v1140_v44  ;;  %v706_v6 = vsel %vm42_vm1, %v1140_v44, 0.0  ;;  %v1509_v53 = vpop.f32.mrf.mxu1 }
  0xf4   :  { %v701_v48 = vadd.f32 %v700_v47, %v699_v43  ;;  %v893_v49 = vadd.f32 %v892_v45, %v891_v42  ;;  %v488_v50 = vpop.f32.mrf.mxu0 }
  0xf5   :  { %v702_v55 = vsel %vm42_vm1, %v488_v50, 0.0  ;;  %v812_v56 = vmul.f32 %v488_v50, %v488_v50  ;;  %v900_v13 = vsel %vm42_vm1, %v814_v62, 0.0 }
  0xf6   :  { %v895_v57 = vadd.f32 %v894_v54, %v893_v49  ;;  %v703_v58 = vadd.f32 %v702_v55, %v701_v48  ;;  %v1143_v59 = vpop.f32.mrf.mxu0 }
  0xf7   :  { %v896_v63 = vsel %vm42_vm1, %v812_v56, 0.0  ;;  %v817_v20 = vmul.f32 %v1143_v59, %v1143_v59  ;;  %v712_v29 = vsel %vm42_vm1, %v1143_v59, 0.0 }
  0xf8   :  { %v705_v0 = vadd.f32 %v704_v61, %v703_v58  ;;  %v897_v1 = vadd.f32 %v896_v63, %v895_v57  ;;  %v501_v2 = vpop.f32.mrf.mxu0 }
  0xf9   :  { %v815_v8 = vmul.f32 %v501_v2, %v501_v2  ;;  %v708_v14 = vsel %vm42_vm1, %v501_v2, 0.0  ;;  %v906_v38 = vsel %vm42_vm1, %v817_v20, 0.0  ;;  %v1515_v2 = vpop.f32.mrf.mxu1  ;;  %v825_v20 = vmul.f32 %v1431_v4, %v1431_v4 }
  0xfa   :  { %v899_v9 = vadd.f32 %v898_v5, %v897_v1  ;;  %v707_v10 = vadd.f32 %v706_v6, %v705_v0  ;;  %v1144_v12 = vpop.f32.mrf.mxu0 }
  0xfb   :  { %v902_v22 = vsel %vm42_vm1, %v815_v8, 0.0  ;;  %v818_v30 = vmul.f32 %v1144_v12, %v1144_v12  ;;  %v714_v40 = vsel %vm42_vm1, %v1144_v12, 0.0  ;;  %v823_v8 = vmul.f32 %v1435_v11, %v1435_v11 }
  0xfc   :  { %v709_v15 = vadd.f32 %v708_v14, %v707_v10  ;;  %v901_v16 = vadd.f32 %v900_v13, %v899_v9  ;;  %v504_v17 = vpop.f32.mrf.mxu0  ;;  %v724_v13 = vsel %vm42_vm1, %v1435_v11, 0.0  ;;  %v824_v14 = vmul.f32 %v1443_v24, %v1443_v24 }
  0xfd   :  { %v710_v23 = vsel %vm42_vm1, %v504_v17, 0.0  ;;  %v816_v25 = vmul.f32 %v504_v17, %v504_v17  ;;  %v908_v45 = vsel %vm42_vm1, %v818_v30, 0.0  ;;  %v1526_v17 = vpop.f32.mrf.mxu1  ;;  %v728_v11 = vsel %vm42_vm1, %v1431_v4, 0.0 }
  0xfe   :  { %v903_v26 = vadd.f32 %v902_v22, %v901_v16  ;;  %v711_v27 = vadd.f32 %v710_v23, %v709_v15  ;;  %v1147_v28 = vpop.f32.mrf.mxu0  ;;  %v918_v22 = vsel %vm42_vm1, %v823_v8, 0.0  ;;  %v726_v23 = vsel %vm42_vm1, %v1443_v24, 0.0 }
  0xff   :  { %v904_v31 = vsel %vm42_vm1, %v816_v25, 0.0  ;;  %v821_v54 = vmul.f32 %v1147_v28, %v1147_v28  ;;  %v720_v61 = vsel %vm42_vm1, %v1147_v28, 0.0  ;;  %v920_v28 = vsel %vm42_vm1, %v824_v14, 0.0 }
 0x100   :  { %v713_v33 = vadd.f32 %v712_v29, %v711_v27  ;;  %v905_v34 = vadd.f32 %v904_v31, %v903_v26  ;;  %v517_v35 = vpop.f32.mrf.mxu0  ;;  %v826_v27 = vmul.f32 %v1439_v18, %v1439_v18  ;;  %v1538_v31 = vpop.f32.mrf.mxu1  ;;  %v827_v24 = vmul.f32 %v1451_v39, %v1451_v39 }
 0x101   :  { %v819_v41 = vmul.f32 %v517_v35, %v517_v35  ;;  %v716_v47 = vsel %vm42_vm1, %v517_v35, 0.0  ;;  %v914_v5 = vsel %vm42_vm1, %v821_v54, 0.0 }
 0x102   :  { %v907_v42 = vadd.f32 %v906_v38, %v905_v34  ;;  %v715_v43 = vadd.f32 %v714_v40, %v713_v33  ;;  %v1148_v44 = vpop.f32.mrf.mxu0  ;;  %v922_v33 = vsel %vm42_vm1, %v825_v20, 0.0  ;;  %v730_v34 = vsel %vm42_vm1, %v1439_v18, 0.0 }
 0x103   :  { %v910_v55 = vsel %vm42_vm1, %v819_v41, 0.0  ;;  %v822_v62 = vmul.f32 %v1148_v44, %v1148_v44  ;;  %v722_v6 = vsel %vm42_vm1, %v1148_v44, 0.0  ;;  %v924_v4 = vsel %vm42_vm1, %v826_v27, 0.0  ;;  %v1550_v44 = vpop.f32.mrf.mxu1 }
 0x104   :  { %v717_v48 = vadd.f32 %v716_v47, %v715_v43  ;;  %v909_v49 = vadd.f32 %v908_v45, %v907_v42  ;;  %v520_v50 = vpop.f32.mrf.mxu0  ;;  %v732_v40 = vsel %vm42_vm1, %v1451_v39, 0.0  ;;  %v828_v41 = vmul.f32 %v1459_v52, %v1459_v52 }
 0x105   :  { %v718_v56 = vsel %vm42_vm1, %v520_v50, 0.0  ;;  %v820_v57 = vmul.f32 %v520_v50, %v520_v50  ;;  %v916_v12 = vsel %vm42_vm1, %v822_v62, 0.0  ;;  %v829_v18 = vmul.f32 %v1447_v32, %v1447_v32 }
 0x106   :  { %v911_v58 = vadd.f32 %v910_v55, %v909_v49  ;;  %v719_v59 = vadd.f32 %v718_v56, %v717_v48  ;;  %v926_v45 = vsel %vm42_vm1, %v827_v24, 0.0  ;;  %v734_v47 = vsel %vm42_vm1, %v1459_v52, 0.0 }
 0x107   :  { %v912_v63 = vsel %vm42_vm1, %v820_v57, 0.0  ;;  %v736_v39 = vsel %vm42_vm1, %v1447_v32, 0.0  ;;  %v830_v50 = vmul.f32 %v1455_v46, %v1455_v46  ;;  %v928_v54 = vsel %vm42_vm1, %v828_v41, 0.0  ;;  %v1562_v57 = vpop.f32.mrf.mxu1 }
 0x108   :  { %v721_v0 = vadd.f32 %v720_v61, %v719_v59  ;;  %v913_v1 = vadd.f32 %v912_v63, %v911_v58  ;;  %v930_v58 = vsel %vm42_vm1, %v829_v18, 0.0  ;;  %v738_v59 = vsel %vm42_vm1, %v1455_v46, 0.0 }
 0x109   :  { %v831_v52 = vmul.f32 %v1467_v7, %v1467_v7  ;;  %v932_v32 = vsel %vm42_vm1, %v830_v50, 0.0  ;;  %v740_v63 = vsel %vm42_vm1, %v1467_v7, 0.0  ;;  %v833_v46 = vmul.f32 %v1463_v60, %v1463_v60 }
 0x10a   :  { %v723_v9 = vadd.f32 %v722_v6, %v721_v0  ;;  %v915_v10 = vadd.f32 %v914_v5, %v913_v1  ;;  %v832_v0 = vmul.f32 %v1479_v37, %v1479_v37  ;;  %v1574_v6 = vpop.f32.mrf.mxu1  ;;  %v744_v7 = vsel %vm42_vm1, %v1463_v60, 0.0 }
 0x10b   :  { %v934_v8 = vsel %vm42_vm1, %v831_v52, 0.0  ;;  %v836_v27 = vmul.f32 %v1503_v36, %v1503_v36  ;;  %v754_v18 = vsel %vm42_vm1, %v1497_v19, 0.0  ;;  %v760_v52 = vsel %vm42_vm1, %v1509_v53, 0.0 }
 0x10c   :  { %v917_v15 = vadd.f32 %v916_v12, %v915_v10  ;;  %v725_v16 = vadd.f32 %v724_v13, %v723_v9  ;;  %v742_v9 = vsel %vm42_vm1, %v1479_v37, 0.0  ;;  %v834_v13 = vmul.f32 %v1473_v21, %v1473_v21  ;;  %v616_v20 = vpop.f32.mrf.mxu1 }
 0x10d   :  { %v936_v14 = vsel %vm42_vm1, %v832_v0, 0.0  ;;  %v835_v37 = vmul.f32 %v1491_v3, %v1491_v3 }
 0x10e   :  { %v727_v25 = vadd.f32 %v726_v23, %v725_v16  ;;  %v919_v26 = vadd.f32 %v918_v22, %v917_v15  ;;  %v938_v22 = vsel %vm42_vm1, %v833_v46, 0.0  ;;  %v746_v23 = vsel %vm42_vm1, %v1473_v21, 0.0 }
 0x10f   :  { %v940_v60 = vsel %vm42_vm1, %v834_v13, 0.0  ;;  %v837_v21 = vmul.f32 %v1485_v51, %v1485_v51  ;;  %v845_v13 = vmul.f32 %v1550_v44, %v1550_v44 }
 0x110   :  { %v729_v29 = vadd.f32 %v728_v11, %v727_v25  ;;  %v921_v30 = vadd.f32 %v920_v28, %v919_v26  ;;  %v748_v11 = vsel %vm42_vm1, %v1491_v3, 0.0  ;;  %v752_v3 = vsel %vm42_vm1, %v1485_v51, 0.0 }
 0x112   :  { %v923_v35 = vadd.f32 %v922_v33, %v921_v30  ;;  %v731_v38 = vadd.f32 %v730_v34, %v729_v29  ;;  %v1596_v30 = vpop.f32.mrf.mxu1  ;;  %v942_v33 = vsel %vm42_vm1, %v835_v37, 0.0  ;;  %v750_v34 = vsel %vm42_vm1, %v1503_v36, 0.0 }
 0x113   :  { %v839_v36 = vmul.f32 %v1515_v2, %v1515_v2 }
 0x114   :  { %v733_v42 = vadd.f32 %v732_v40, %v731_v38  ;;  %v925_v43 = vadd.f32 %v924_v4, %v923_v35  ;;  %v838_v38 = vmul.f32 %v1497_v19, %v1497_v19  ;;  %v944_v4 = vsel %vm42_vm1, %v836_v27, 0.0 }
 0x115   :  { %v950_v19 = vsel %vm42_vm1, %v839_v36, 0.0 }
 0x116   :  { %v927_v48 = vadd.f32 %v926_v45, %v925_v43  ;;  %v735_v49 = vadd.f32 %v734_v47, %v733_v42  ;;  %v629_v42 = vpop.f32.mrf.mxu1  ;;  %v946_v43 = vsel %vm42_vm1, %v837_v21, 0.0  ;;  %v948_v51 = vsel %vm42_vm1, %v838_v38, 0.0 }
 0x117   :  { %v847_v27 = vmul.f32 %v629_v42, %v629_v42 }
 0x118   :  { %v737_v55 = vadd.f32 %v736_v39, %v735_v49  ;;  %v929_v56 = vadd.f32 %v928_v54, %v927_v48  ;;  %v756_v48 = vsel %vm42_vm1, %v1515_v2, 0.0  ;;  %v840_v49 = vmul.f32 %v1538_v31, %v1538_v31  ;;  %v1176_v54 = vpop.f32.mrf.mxu1 }
 0x119   :  { %v842_v2 = vmul.f32 %v1526_v17, %v1526_v17 }
 0x11a   :  { %v931_v61 = vadd.f32 %v930_v58, %v929_v56  ;;  %v739_v62 = vadd.f32 %v738_v59, %v737_v55  ;;  %v841_v55 = vmul.f32 %v1509_v53, %v1509_v53  ;;  %v758_v56 = vsel %vm42_vm1, %v1538_v31, 0.0 }
 0x11b   :  { %v843_v31 = vmul.f32 %v1562_v57, %v1562_v57  ;;  %v956_v53 = vsel %vm42_vm1, %v842_v2, 0.0 }
 0x11c   :  { %v741_v1 = vadd.f32 %v740_v63, %v739_v62  ;;  %v933_v5 = vadd.f32 %v932_v32, %v931_v61  ;;  %v952_v61 = vsel %vm42_vm1, %v840_v49, 0.0  ;;  %v632_v63 = vpop.f32.mrf.mxu1  ;;  %v954_v0 = vsel %vm42_vm1, %v841_v55, 0.0 }
 0x11d   :  { %v848_v21 = vmul.f32 %v632_v63, %v632_v63  ;;  %v774_v38 = vsel %vm42_vm1, %v632_v63, 0.0 }
 0x11e   :  { %v935_v10 = vadd.f32 %v934_v8, %v933_v5  ;;  %v743_v12 = vadd.f32 %v742_v9, %v741_v1  ;;  %v762_v1 = vsel %vm42_vm1, %v1526_v17, 0.0  ;;  %v764_v8 = vsel %vm42_vm1, %v1562_v57, 0.0 }
 0x11f   :  { %v844_v9 = vmul.f32 %v616_v20, %v616_v20  ;;  %v766_v17 = vsel %vm42_vm1, %v616_v20, 0.0 }
 0x120   :  { %v745_v15 = vadd.f32 %v744_v7, %v743_v12  ;;  %v937_v16 = vadd.f32 %v936_v14, %v935_v10  ;;  %v1179_v7 = vpop.f32.mrf.mxu1  ;;  %v958_v14 = vsel %vm42_vm1, %v843_v31, 0.0  ;;  %v660_v31 = vld [vmem:[#allocation2] sm:$0xff] }
 0x121   :  { %v960_v57 = vsel %vm42_vm1, %v844_v9, 0.0 }
 0x122   :  { %v939_v25 = vadd.f32 %v938_v22, %v937_v16  ;;  %v747_v26 = vadd.f32 %v746_v23, %v745_v15  ;;  %v768_v22 = vsel %vm42_vm1, %v1550_v44, 0.0  ;;  %v846_v23 = vmul.f32 %v1574_v6, %v1574_v6 }
 0x123   :  { %v772_v44 = vsel %vm42_vm1, %v629_v42, 0.0 }
 0x124   :  { %v749_v28 = vadd.f32 %v748_v11, %v747_v26  ;;  %v941_v29 = vadd.f32 %v940_v60, %v939_v25  ;;  %v645_v26 = vpop.f32.mrf.mxu1  ;;  %v962_v60 = vsel %vm42_vm1, %v845_v13, 0.0  ;;  %v770_v11 = vsel %vm42_vm1, %v1574_v6, 0.0 }
 0x126   :  { %v943_v24 = vadd.f32 %v942_v33, %v941_v29  ;;  %v751_v35 = vadd.f32 %v750_v34, %v749_v28  ;;  %v964_v29 = vsel %vm42_vm1, %v846_v23, 0.0 }
 0x128   :  { %v753_v40 = vadd.f32 %v752_v3, %v751_v35  ;;  %v945_v41 = vadd.f32 %v944_v4, %v943_v24  ;;  %v1180_v24 = vpop.f32.mrf.mxu1  ;;  %v849_v35 = vmul.f32 %v1596_v30, %v1596_v30  ;;  %v966_v3 = vsel %vm42_vm1, %v847_v27, 0.0 }
 0x12a   :  { %v947_v45 = vadd.f32 %v946_v43, %v945_v41  ;;  %v755_v47 = vadd.f32 %v754_v18, %v753_v40  ;;  %v776_v40 = vsel %vm42_vm1, %v1596_v30, 0.0  ;;  %v850_v41 = vmul.f32 %v1176_v54, %v1176_v54  ;;  %v648_v36 = vpop.f32.mrf.mxu1 }
 0x12b   :  { %v968_v43 = vsel %vm42_vm1, %v848_v21, 0.0  ;;  %v852_v55 = vmul.f32 %v648_v36, %v648_v36 }
 0x12c   :  { %v757_v39 = vadd.f32 %v756_v48, %v755_v47  ;;  %v949_v50 = vadd.f32 %v948_v51, %v947_v45  ;;  %v970_v45 = vsel %vm42_vm1, %v849_v35, 0.0  ;;  %v778_v47 = vsel %vm42_vm1, %v1176_v54, 0.0 }
 0x12d   :  { %v851_v51 = vmul.f32 %v645_v26, %v645_v26  ;;  %v854_v54 = vmul.f32 %v1180_v24, %v1180_v24 }
 0x12e   :  { %v951_v58 = vadd.f32 %v950_v19, %v949_v50  ;;  %v759_v59 = vadd.f32 %v758_v56, %v757_v39  ;;  %v972_v39 = vsel %vm42_vm1, %v850_v41, 0.0  ;;  %v780_v50 = vsel %vm42_vm1, %v645_v26, 0.0 }
 0x12f   :  { %v853_v56 = vmul.f32 %v1179_v7, %v1179_v7 }
 0x130   :  { %v761_v62 = vadd.f32 %v760_v52, %v759_v59  ;;  %v953_v32 = vadd.f32 %v952_v61, %v951_v58  ;;  %v974_v58 = vsel %vm42_vm1, %v851_v51, 0.0  ;;  %v782_v59 = vsel %vm42_vm1, %v648_v36, 0.0 }
 0x131   :  { %v784_v61 = vsel %vm42_vm1, %v1179_v7, 0.0 }
 0x132   :  { %v955_v5 = vadd.f32 %v954_v0, %v953_v32  ;;  %v763_v46 = vadd.f32 %v762_v1, %v761_v62  ;;  %v976_v62 = vsel %vm42_vm1, %v852_v55, 0.0  ;;  %v978_v0 = vsel %vm42_vm1, %v853_v56, 0.0 }
 0x133   :  { %v786_v1 = vsel %vm42_vm1, %v1180_v24, 0.0 }
 0x134   :  { %v765_v10 = vadd.f32 %v764_v8, %v763_v46  ;;  %v957_v12 = vadd.f32 %v956_v53, %v955_v5  ;;  %v980_v53 = vsel %vm42_vm1, %v854_v54, 0.0  ;;  %v790_v8 = vld [vmem:[#allocation4] sm:$0xff] }
 0x136   :  { %v959_v15 = vadd.f32 %v958_v14, %v957_v12  ;;  %v767_v16 = vadd.f32 %v766_v17, %v765_v10 }
 0x138   :  { %v769_v37 = vadd.f32 %v768_v22, %v767_v16  ;;  %v961_v25 = vadd.f32 %v960_v57, %v959_v15 }
 0x13a   :  { %v963_v20 = vadd.f32 %v962_v60, %v961_v25  ;;  %v771_v28 = vadd.f32 %v770_v11, %v769_v37 }
 0x13c   :  { %v773_v33 = vadd.f32 %v772_v44, %v771_v28  ;;  %v965_v34 = vadd.f32 %v964_v29, %v963_v20 }
 0x13e   :  { %v967_v4 = vadd.f32 %v966_v3, %v965_v34  ;;  %v775_v6 = vadd.f32 %v774_v38, %v773_v33 }
 0x140   :  { %v777_v42 = vadd.f32 %v776_v40, %v775_v6  ;;  %v969_v18 = vadd.f32 %v968_v43, %v967_v4 }
 0x142   :  { %v971_v48 = vadd.f32 %v970_v45, %v969_v18  ;;  %v779_v49 = vadd.f32 %v778_v47, %v777_v42 }
 0x144   :  { %v781_v19 = vadd.f32 %v780_v50, %v779_v49  ;;  %v973_v30 = vadd.f32 %v972_v39, %v971_v48 }
 0x146   :  { %v975_v52 = vadd.f32 %v974_v58, %v973_v30  ;;  %v783_v2 = vadd.f32 %v782_v59, %v781_v19 }
 0x148   :  { %v785_v32 = vadd.f32 %v784_v61, %v783_v2  ;;  %v977_v63 = vadd.f32 %v976_v62, %v975_v52 }
 0x14a   :  { %v787_v5 = vadd.f32 %v786_v1, %v785_v32  ;;  %v979_v46 = vadd.f32 %v978_v0, %v977_v63 }
 0x14c   :  { %v981_v9 = vadd.f32 %v980_v53, %v979_v46  ;;  %v788_v10 = vadd.f32 %v787_v5, %v660_v31 }
 0x14e   :  { %789 = vst.msk [vmem:[#allocation2] sm:$0xff] %vm42_vm1, %v788_v10  ;;  %v982_v12 = vadd.f32 %v981_v9, %v790_v8 }
 0x14f   :  { %1231 = shalt.err (!%p1228_p4)
}
 0x150   :  { %993 = dma.vmem_to_hbm [thread:$0]  %s991_s21, 128, %s1678_s2, [#allocation3]   ;;  %983 = vst.msk [vmem:[#allocation4] sm:$0xff] %vm42_vm1, %v982_v12 }
 0x151   :  { %s1240_s27 = scalar_lea.vmem %s1001_s23, 128  ;;  %p1245_p6 = scmp.lt.s32.totalorder %s1001_s23, %s1001_s23 }
 0x152   :  { %p1241_p5 = scmp.ne.s32.totalorder %s1001_s23, %s1240_s27  ;;  %p1246_p7 = scmp.lt.s32.totalorder %s1240_s27, %s1240_s27 }
 0x154   :  { %p1247_p8 = por %p1246_p7, %p1245_p6 }
 0x156   :  { %p1248_p9 = pnand %p1247_p8, %p1241_p5 }
 0x158   :  { %1251 = shalt.err (!%p1248_p9)
}
 0x159   :  { %1003 = dma.vmem_to_hbm [thread:$0]  %s1001_s23, 128, %s1679_s3, [#allocation5]  }
 0x15a   :  { %1260 = dma.done.wait [#allocation3], 128  }
 0x15b   :  { %1261 = vsyncadd [#allocation3], 4294967168 }
 0x15c   :  { %1262 = dma.done.wait [#allocation5], 128  }
 0x15d   :  { %1263 = vsyncadd [#allocation5], 4294967168 }
 0x15e   :  { %1010 = vsyncpa [#allocation3], 1 }
 0x15f   :  { %1011 = vsyncpa [#allocation5], 1 }

</bundles_post_ra>
